<compile_context>
chip_gen: v6e
topology: v6e:2x2x1
jax: 0.10.0
libtpu: 0.0.40
codegen_flags: <defaults>
</compile_context>

<pallas_src>
import math

import jax
import jax.numpy as jnp
from jax import lax
from jax.experimental import pallas as pl
from jax.experimental.pallas import tpu as pltpu


def _round_up(x, m):
    return (x + m - 1) // m * m


def _rnn_chunk_kernel(x_ref, h0_ref, wih_t_ref, whh_t_ref, b_ref,
                      wout_ref, bout_ref, pred_ref, h_scratch, hs_scratch):
    """One grid step = one chunk of t_chunk timesteps.

    x_ref      : (rows, in_size)          time-major flattened inputs (rows = t_chunk*batch_pad)
    h0_ref     : (batch_pad, hidden)      initial hidden state (batch padded to 8)
    wih_t_ref  : (in_size, hidden)        W_ih^T
    whh_t_ref  : (hidden, hidden)         W_hh^T
    b_ref      : (1, hidden)              b_ih + b_hh (pre-summed)
    wout_ref   : (out_pad, hidden)        W_out (rows padded to 8)
    bout_ref   : (out_pad, 1)             b_out
    pred_ref   : (out_pad, rows)          TRANSPOSED output block (lane-dense)
    h_scratch  : (batch_pad, hidden)      recurrent state, persists across chunks
    hs_scratch : (rows, hidden)           per-chunk projection / hidden-state buffer
    """
    batch_pad = h_scratch.shape[0]
    rows = hs_scratch.shape[0]
    t_chunk = rows // batch_pad
    in_size = x_ref.shape[1]

    # Initialize the recurrent state from h0 on the first chunk only.
    @pl.when(pl.program_id(0) == 0)
    def _():
        h_scratch[...] = h0_ref[...]

    # ---- Batched input projection for the whole chunk ----------------------
    x = x_ref[...]
    if in_size == 1:
        # K = 1 matmul is an outer product: keep it on the VPU, skip the MXU.
        hs_scratch[...] = x * wih_t_ref[...] + b_ref[...]
    else:
        hs_scratch[...] = (
            jnp.dot(x, wih_t_ref[...], preferred_element_type=jnp.float32)
            + b_ref[...])

    whh_t = whh_t_ref[...]          # hoisted constant load (RHS fixed per step)
    h_init = h_scratch[...]

    # ---- Sequential tanh recurrence (full-tile aligned per-step access) ----
    def step(t, h):
        start = pl.multiple_of(t * batch_pad, 8)      # aligned 8-sublane tile
        row = pl.ds(start, batch_pad)
        pre = hs_scratch[row, :] + jnp.dot(h, whh_t,
                                           preferred_element_type=jnp.float32)
        h_new = jnp.tanh(pre)
        hs_scratch[row, :] = h_new                    # unmasked full-tile store
        return h_new

    h_last = lax.fori_loop(0, t_chunk, step, h_init, unroll=min(8, t_chunk))
    h_scratch[...] = h_last         # carry state to the next chunk
    # NOTE: on padded tail timesteps h_scratch keeps evolving; it is never
    # returned, and the corresponding outputs are sliced away in the wrapper.

    # ---- Fused Linear + ReLU head, emitted transposed (lane-dense) ---------
    # out_t[o, r] = sum_h W_out[o, h] * hs[r, h]   (A @ B^T pattern)
    out_t = lax.dot_general(
        wout_ref[...], hs_scratch[...],
        dimension_numbers=(((1,), (1,)), ((), ())),
        preferred_element_type=jnp.float32) + bout_ref[...]
    pred_ref[...] = jnp.maximum(out_t, 0.0).astype(pred_ref.dtype)


def _pick_chunk(seq_len, batch_pad, hidden, target_rows=2048,
                hs_budget_bytes=8 << 20):
    """Timesteps per grid step.  Targets ~2048 rows per chunk (amortizes the
    per-grid-step pipeline overhead), capped by a hidden-dependent VMEM budget
    (keeps the chunk buffer small enough for v7x's 64 MiB VMEM)."""
    rows_cap = max(128, hs_budget_bytes // (4 * hidden))
    target = int(min(target_rows, rows_cap))
    if seq_len * batch_pad <= target:
        return seq_len                                   # single chunk
    gran = 128 // math.gcd(batch_pad, 128)               # rows % 128 == 0
    t_chunk = max(gran, ((target // batch_pad) // gran) * gran)
    return min(t_chunk, _round_up(seq_len, gran))


def rnn_forward(input_seq, batch_size, hidden_cell, pred_length, params,
                t_chunk=None):
    """Pallas equivalent of RNN.forward (type_actifun='relu')."""
    w_ih, w_hh, b_ih, b_hh, w_out, b_out = params
    hidden = w_hh.shape[0]
    in_size = w_ih.shape[1]
    out_size = w_out.shape[0]
    seq_len = int(input_seq.shape[0])

    batch_pad = _round_up(batch_size, 8)    # full-sublane recurrence tiles
    out_pad = _round_up(out_size, 8)        # clean (8,128) head / output tiles

    # hidden_cell is an (h0, c0)-style tuple; the module uses hidden_cell[0].
    h0 = hidden_cell[0]
    assert h0.shape[0] == 1, "only num_layers * num_directions == 1 supported"
    h0p = jnp.zeros((batch_pad, hidden), jnp.float32).at[:batch_size].set(
        h0[0].astype(jnp.float32))

    # --- chunking (sanitize caller-provided t_chunk: keep blocks legal) -----
    gran = 128 // math.gcd(batch_pad, 128)
    if t_chunk is None:
        t_chunk = _pick_chunk(seq_len, batch_pad, hidden)
    else:
        t_chunk = min(_round_up(int(t_chunk), gran), _round_up(seq_len, gran))
    num_chunks = pl.cdiv(seq_len, t_chunk)
    seq_pad = num_chunks * t_chunk
    rows = t_chunk * batch_pad

    # --- host-side layout plumbing (done once, not per timestep) ------------
    x = input_seq.reshape(seq_len, batch_size, -1).astype(jnp.float32)
    x = jnp.pad(x, ((0, seq_pad - seq_len), (0, batch_pad - batch_size), (0, 0)))
    x2d = x.reshape(seq_pad * batch_pad, in_size)

    wih_t = w_ih.astype(jnp.float32).T                          # (in, hidden)
    whh_t = w_hh.astype(jnp.float32).T                          # (hidden, hidden)
    b_sum = (b_ih + b_hh).astype(jnp.float32).reshape(1, hidden)
    wout_p = jnp.zeros((out_pad, hidden), jnp.float32).at[:out_size].set(
        w_out.astype(jnp.float32))
    bout_p = jnp.zeros((out_pad, 1), jnp.float32).at[:out_size, 0].set(
        b_out.astype(jnp.float32))

    # --- VMEM budget + cost estimate ----------------------------------------
    def tile_bytes(r, c):
        return _round_up(r, 8) * _round_up(c, 128) * 4

    vmem_est = (tile_bytes(rows, hidden) + tile_bytes(batch_pad, hidden)
                + 2 * tile_bytes(rows, in_size) + 2 * tile_bytes(out_pad, rows)
                + 2 * (tile_bytes(batch_pad, hidden) + tile_bytes(in_size, hidden)
                       + tile_bytes(hidden, hidden) + tile_bytes(1, hidden)
                       + tile_bytes(out_pad, hidden) + tile_bytes(out_pad, 1)))
    vmem_limit = int(min(48 << 20, max(16 << 20, 2 * vmem_est)))

    cost = pl.CostEstimate(
        flops=2 * seq_pad * batch_pad * hidden * (in_size + hidden + out_pad),
        transcendentals=seq_pad * batch_pad * hidden,
        bytes_accessed=4 * (int(x2d.size) + out_pad * seq_pad * batch_pad
                            + int(wih_t.size) + int(whh_t.size)
                            + int(wout_p.size) + int(b_sum.size)
                            + int(bout_p.size) + int(h0p.size)))

    grid_spec = pltpu.PrefetchScalarGridSpec(
        num_scalar_prefetch=0,
        grid=(num_chunks,),
        in_specs=[
            pl.BlockSpec((rows, in_size), lambda c: (c, 0)),        # x chunk
            pl.BlockSpec((batch_pad, hidden), lambda c: (0, 0)),    # h0
            pl.BlockSpec((in_size, hidden), lambda c: (0, 0)),      # W_ih^T
            pl.BlockSpec((hidden, hidden), lambda c: (0, 0)),       # W_hh^T
            pl.BlockSpec((1, hidden), lambda c: (0, 0)),            # b_ih+b_hh
            pl.BlockSpec((out_pad, hidden), lambda c: (0, 0)),      # W_out
            pl.BlockSpec((out_pad, 1), lambda c: (0, 0)),           # b_out
        ],
        out_specs=pl.BlockSpec((out_pad, rows), lambda c: (0, c)),  # lane-dense
        scratch_shapes=[
            pltpu.VMEM((batch_pad, hidden), jnp.float32),   # recurrent h
            pltpu.VMEM((rows, hidden), jnp.float32),        # chunk hiddens
        ],
    )

    preds_t = pl.pallas_call(
        _rnn_chunk_kernel,
        out_shape=jax.ShapeDtypeStruct((out_pad, seq_pad * batch_pad),
                                       jnp.float32),
        grid_spec=grid_spec,
        compiler_params=pltpu.CompilerParams(
            dimension_semantics=("arbitrary",),     # sequential recurrence
            vmem_limit_bytes=vmem_limit),
        cost_estimate=cost,
    )(x2d, h0p, wih_t, whh_t, b_sum, wout_p, bout_p)

    # Undo the transposed / padded layout on the host side.
    preds = preds_t[:out_size].T.reshape(seq_pad, batch_pad, out_size)
    preds = preds[:seq_len, :batch_size, :]
    return preds[-pred_length:]


def _reference_forward(input_seq, batch_size, hidden_cell, pred_length, params):
    """Pure-JAX reference mirroring torch semantics (for validation)."""
    w_ih, w_hh, b_ih, b_hh, w_out, b_out = params
    h0 = hidden_cell[0][0]                                   # (batch, hidden)
    x = input_seq.reshape(input_seq.shape[0], batch_size, -1)

    def step(h, x_t):
        h_new = jnp.tanh(x_t @ w_ih.T + b_ih + h @ w_hh.T + b_hh)
        return h_new, h_new

    _, hs = jax.lax.scan(step, h0, x)                        # (seq, batch, H)
    out = jnp.maximum(hs @ w_out.T + b_out, 0.0)             # (seq, batch, out)
    return out[-pred_length:]


if __name__ == "__main__":
    def make_case(key, seq_len, batch, input_size, hidden, output_size):
        ks = jax.random.split(key, 8)
        bound = 1.0 / jnp.sqrt(hidden)
        w_ih = jax.random.uniform(ks[0], (hidden, input_size), jnp.float32, -bound, bound)
        w_hh = jax.random.uniform(ks[1], (hidden, hidden), jnp.float32, -bound, bound)
        b_ih = jax.random.uniform(ks[2], (hidden,), jnp.float32, -bound, bound)
        b_hh = jax.random.uniform(ks[3], (hidden,), jnp.float32, -bound, bound)
        w_out = jax.random.uniform(ks[4], (output_size, hidden), jnp.float32, -bound, bound)
        b_out = jax.random.uniform(ks[5], (output_size,), jnp.float32, -bound, bound)
        params = (w_ih, w_hh, b_ih, b_hh, w_out, b_out)
        input_seq = jax.random.normal(ks[6], (seq_len, batch, input_size), jnp.float32)
        h0 = jax.random.normal(ks[7], (1, batch, hidden), jnp.float32)
        c0 = jnp.zeros((1, batch, hidden), jnp.float32)     # unused, mirrors signature
        return input_seq, (h0, c0), params

    key = jax.random.PRNGKey(0)
    k1, k2 = jax.random.split(key)

    # Case 1: small config, single-chunk path (module-like shapes).
    seq_len, batch, input_size, hidden, output_size, pred_length = 8, 2, 1, 32, 1, 3
    input_seq, hidden_cell, params = make_case(k1, seq_len, batch, input_size,
                                               hidden, output_size)
    preds = rnn_forward(input_seq, batch, hidden_cell, pred_length, params)
    preds = jax.block_until_ready(preds)
    ref = _reference_forward(input_seq, batch, hidden_cell, pred_length, params)
    assert preds.shape == (pred_length, batch, output_size)
    assert jnp.allclose(preds, ref, atol=1e-5, rtol=1e-5), "case1 mismatch"

    # Case 2: longer sequence, forced small t_chunk -> multi-chunk pipelined path.
    seq_len, batch, input_size, hidden, output_size, pred_length = 40, 2, 1, 32, 1, 5
    input_seq, hidden_cell, params = make_case(k2, seq_len, batch, input_size,
                                               hidden, output_size)
    preds = rnn_forward(input_seq, batch, hidden_cell, pred_length, params,
                        t_chunk=16)
    preds = jax.block_until_ready(preds)
    ref = _reference_forward(input_seq, batch, hidden_cell, pred_length, params)
    assert preds.shape == (pred_length, batch, output_size)
    assert jnp.allclose(preds, ref, atol=1e-5, rtol=1e-5), "case2 mismatch"

    print("KERNEL_OK")
</pallas_src>

<mosaic_0001>
module attributes {stable_mosaic.version = 11 : i64} {
  func.func @_rnn_chunk_kernel(%arg0: i32, %arg1: memref<64x1xf32, #tpu.memory_space<vmem>>, %arg2: memref<8x32xf32, #tpu.memory_space<vmem>>, %arg3: memref<1x32xf32, #tpu.memory_space<vmem>>, %arg4: memref<32x32xf32, #tpu.memory_space<vmem>>, %arg5: memref<1x32xf32, #tpu.memory_space<vmem>>, %arg6: memref<8x32xf32, #tpu.memory_space<vmem>>, %arg7: memref<8x1xf32, #tpu.memory_space<vmem>>, %arg8: memref<8x64xf32, #tpu.memory_space<vmem>>, %arg9: memref<8x32xf32, #tpu.memory_space<vmem>>, %arg10: memref<64x32xf32, #tpu.memory_space<vmem>>) attributes {dimension_semantics = [#tpu.dimension_semantics<arbitrary>], iteration_bounds = array<i64: 1>, scalar_prefetch = 0 : i64, scratch_operands = 2 : i64, tpu.core_type = #tpu.core_type<tc>, window_params = [{transform_indices = @transform_0, window_bounds = array<i64: 64, 1>}, {pipeline_mode = #tpu.pipeline_mode<synchronous>, transform_indices = @transform_1, window_bounds = array<i64: 8, 32>}, {pipeline_mode = #tpu.pipeline_mode<synchronous>, transform_indices = @transform_2, window_bounds = array<i64: 1, 32>}, {pipeline_mode = #tpu.pipeline_mode<synchronous>, transform_indices = @transform_3, window_bounds = array<i64: 32, 32>}, {pipeline_mode = #tpu.pipeline_mode<synchronous>, transform_indices = @transform_4, window_bounds = array<i64: 1, 32>}, {pipeline_mode = #tpu.pipeline_mode<synchronous>, transform_indices = @transform_5, window_bounds = array<i64: 8, 32>}, {pipeline_mode = #tpu.pipeline_mode<synchronous>, transform_indices = @transform_6, window_bounds = array<i64: 8, 1>}, {transform_indices = @transform_7, window_bounds = array<i64: 8, 64>}]} {
    %c0_i32 = arith.constant 0 : i32
    %0 = arith.cmpi eq, %arg0, %c0_i32 : i32
    %1 = arith.extui %0 : i1 to i32
    %c0_i32_0 = arith.constant 0 : i32
    %2 = arith.cmpi ne, %1, %c0_i32_0 : i32
    scf.if %2 {
      %c0_56 = arith.constant 0 : index
      %c0_57 = arith.constant 0 : index
      %96 = vector.load %arg2[%c0_56, %c0_57] : memref<8x32xf32, #tpu.memory_space<vmem>>, vector<8x32xf32>
      %c0_58 = arith.constant 0 : index
      %c0_59 = arith.constant 0 : index
      %97 = vector.load %arg9[%c0_58, %c0_59] : memref<8x32xf32, #tpu.memory_space<vmem>>, vector<8x32xf32>
      tpu.vector_store %arg9[%c0_58, %c0_59], %96 {strides = array<i32>} : memref<8x32xf32, #tpu.memory_space<vmem>>, vector<8x32xf32>,
    } else {
    }
    %c0 = arith.constant 0 : index
    %c0_1 = arith.constant 0 : index
    %3 = vector.load %arg1[%c0, %c0_1] : memref<64x1xf32, #tpu.memory_space<vmem>>, vector<64x1xf32>
    %c0_2 = arith.constant 0 : index
    %c0_3 = arith.constant 0 : index
    %4 = vector.load %arg3[%c0_2, %c0_3] : memref<1x32xf32, #tpu.memory_space<vmem>>, vector<1x32xf32>
    %5 = vector.broadcast %3 : vector<64x1xf32> to vector<64x32xf32>
    %6 = vector.broadcast %4 : vector<1x32xf32> to vector<64x32xf32>
    %7 = arith.mulf %5, %6 : vector<64x32xf32>
    %c0_4 = arith.constant 0 : index
    %c0_5 = arith.constant 0 : index
    %8 = vector.load %arg5[%c0_4, %c0_5] : memref<1x32xf32, #tpu.memory_space<vmem>>, vector<1x32xf32>
    %9 = vector.broadcast %8 : vector<1x32xf32> to vector<64x32xf32>
    %10 = arith.addf %7, %9 : vector<64x32xf32>
    %c0_6 = arith.constant 0 : index
    %c0_7 = arith.constant 0 : index
    %11 = vector.load %arg10[%c0_6, %c0_7] : memref<64x32xf32, #tpu.memory_space<vmem>>, vector<64x32xf32>
    tpu.vector_store %arg10[%c0_6, %c0_7], %10 {strides = array<i32>} : memref<64x32xf32, #tpu.memory_space<vmem>>, vector<64x32xf32>,
    %c0_8 = arith.constant 0 : index
    %c0_9 = arith.constant 0 : index
    %12 = vector.load %arg4[%c0_8, %c0_9] : memref<32x32xf32, #tpu.memory_space<vmem>>, vector<32x32xf32>
    %c0_10 = arith.constant 0 : index
    %c0_11 = arith.constant 0 : index
    %13 = vector.load %arg9[%c0_10, %c0_11] : memref<8x32xf32, #tpu.memory_space<vmem>>, vector<8x32xf32>
    %c0_i32_12 = arith.constant 0 : i32
    %c8_i32 = arith.constant 8 : i32
    %14 = arith.muli %c0_i32_12, %c8_i32 : i32
    %15 = tpu.assume_multiple %14, 8 : i32
    %16 = arith.index_cast %15 : i32 to index
    %c0_13 = arith.constant 0 : index
    %17 = vector.load %arg10[%16, %c0_13] : memref<64x32xf32, #tpu.memory_space<vmem>>, vector<8x32xf32>
    %cst = arith.constant dense<0.000000e+00> : vector<8x32xf32>
    %18 = tpu.matmul %13, %12, %cst {dimension_numbers = #tpu.dot_dimension_numbers<[1], [0], [0], [1], [0, 0, 1, 1], [], []>} : vector<8x32xf32>, vector<32x32xf32>, vector<8x32xf32> -> vector<8x32xf32>
    %19 = arith.addf %17, %18 : vector<8x32xf32>
    %20 = math.tanh %19 : vector<8x32xf32>
    %21 = arith.index_cast %15 : i32 to index
    %c0_14 = arith.constant 0 : index
    %22 = vector.load %arg10[%21, %c0_14] : memref<64x32xf32, #tpu.memory_space<vmem>>, vector<8x32xf32>
    tpu.vector_store %arg10[%21, %c0_14], %20 {strides = array<i32>} : memref<64x32xf32, #tpu.memory_space<vmem>>, vector<8x32xf32>,
    %c1_i32 = arith.constant 1 : i32
    %c8_i32_15 = arith.constant 8 : i32
    %23 = arith.muli %c1_i32, %c8_i32_15 : i32
    %24 = tpu.assume_multiple %23, 8 : i32
    %25 = arith.index_cast %24 : i32 to index
    %c0_16 = arith.constant 0 : index
    %26 = vector.load %arg10[%25, %c0_16] : memref<64x32xf32, #tpu.memory_space<vmem>>, vector<8x32xf32>
    %cst_17 = arith.constant dense<0.000000e+00> : vector<8x32xf32>
    %27 = tpu.matmul %20, %12, %cst_17 {dimension_numbers = #tpu.dot_dimension_numbers<[1], [0], [0], [1], [0, 0, 1, 1], [], []>} : vector<8x32xf32>, vector<32x32xf32>, vector<8x32xf32> -> vector<8x32xf32>
    %28 = arith.addf %26, %27 : vector<8x32xf32>
    %29 = math.tanh %28 : vector<8x32xf32>
    %30 = arith.index_cast %24 : i32 to index
    %c0_18 = arith.constant 0 : index
    %31 = vector.load %arg10[%30, %c0_18] : memref<64x32xf32, #tpu.memory_space<vmem>>, vector<8x32xf32>
    tpu.vector_store %arg10[%30, %c0_18], %29 {strides = array<i32>} : memref<64x32xf32, #tpu.memory_space<vmem>>, vector<8x32xf32>,
    %c2_i32 = arith.constant 2 : i32
    %c8_i32_19 = arith.constant 8 : i32
    %32 = arith.muli %c2_i32, %c8_i32_19 : i32
    %33 = tpu.assume_multiple %32, 8 : i32
    %34 = arith.index_cast %33 : i32 to index
    %c0_20 = arith.constant 0 : index
    %35 = vector.load %arg10[%34, %c0_20] : memref<64x32xf32, #tpu.memory_space<vmem>>, vector<8x32xf32>
    %cst_21 = arith.constant dense<0.000000e+00> : vector<8x32xf32>
    %36 = tpu.matmul %29, %12, %cst_21 {dimension_numbers = #tpu.dot_dimension_numbers<[1], [0], [0], [1], [0, 0, 1, 1], [], []>} : vector<8x32xf32>, vector<32x32xf32>, vector<8x32xf32> -> vector<8x32xf32>
    %37 = arith.addf %35, %36 : vector<8x32xf32>
    %38 = math.tanh %37 : vector<8x32xf32>
    %39 = arith.index_cast %33 : i32 to index
    %c0_22 = arith.constant 0 : index
    %40 = vector.load %arg10[%39, %c0_22] : memref<64x32xf32, #tpu.memory_space<vmem>>, vector<8x32xf32>
    tpu.vector_store %arg10[%39, %c0_22], %38 {strides = array<i32>} : memref<64x32xf32, #tpu.memory_space<vmem>>, vector<8x32xf32>,
    %c3_i32 = arith.constant 3 : i32
    %c8_i32_23 = arith.constant 8 : i32
    %41 = arith.muli %c3_i32, %c8_i32_23 : i32
    %42 = tpu.assume_multiple %41, 8 : i32
    %43 = arith.index_cast %42 : i32 to index
    %c0_24 = arith.constant 0 : index
    %44 = vector.load %arg10[%43, %c0_24] : memref<64x32xf32, #tpu.memory_space<vmem>>, vector<8x32xf32>
    %cst_25 = arith.constant dense<0.000000e+00> : vector<8x32xf32>
    %45 = tpu.matmul %38, %12, %cst_25 {dimension_numbers = #tpu.dot_dimension_numbers<[1], [0], [0], [1], [0, 0, 1, 1], [], []>} : vector<8x32xf32>, vector<32x32xf32>, vector<8x32xf32> -> vector<8x32xf32>
    %46 = arith.addf %44, %45 : vector<8x32xf32>
    %47 = math.tanh %46 : vector<8x32xf32>
    %48 = arith.index_cast %42 : i32 to index
    %c0_26 = arith.constant 0 : index
    %49 = vector.load %arg10[%48, %c0_26] : memref<64x32xf32, #tpu.memory_space<vmem>>, vector<8x32xf32>
    tpu.vector_store %arg10[%48, %c0_26], %47 {strides = array<i32>} : memref<64x32xf32, #tpu.memory_space<vmem>>, vector<8x32xf32>,
    %c4_i32 = arith.constant 4 : i32
    %c8_i32_27 = arith.constant 8 : i32
    %50 = arith.muli %c4_i32, %c8_i32_27 : i32
    %51 = tpu.assume_multiple %50, 8 : i32
    %52 = arith.index_cast %51 : i32 to index
    %c0_28 = arith.constant 0 : index
    %53 = vector.load %arg10[%52, %c0_28] : memref<64x32xf32, #tpu.memory_space<vmem>>, vector<8x32xf32>
    %cst_29 = arith.constant dense<0.000000e+00> : vector<8x32xf32>
    %54 = tpu.matmul %47, %12, %cst_29 {dimension_numbers = #tpu.dot_dimension_numbers<[1], [0], [0], [1], [0, 0, 1, 1], [], []>} : vector<8x32xf32>, vector<32x32xf32>, vector<8x32xf32> -> vector<8x32xf32>
    %55 = arith.addf %53, %54 : vector<8x32xf32>
    %56 = math.tanh %55 : vector<8x32xf32>
    %57 = arith.index_cast %51 : i32 to index
    %c0_30 = arith.constant 0 : index
    %58 = vector.load %arg10[%57, %c0_30] : memref<64x32xf32, #tpu.memory_space<vmem>>, vector<8x32xf32>
    tpu.vector_store %arg10[%57, %c0_30], %56 {strides = array<i32>} : memref<64x32xf32, #tpu.memory_space<vmem>>, vector<8x32xf32>,
    %c5_i32 = arith.constant 5 : i32
    %c8_i32_31 = arith.constant 8 : i32
    %59 = arith.muli %c5_i32, %c8_i32_31 : i32
    %60 = tpu.assume_multiple %59, 8 : i32
    %61 = arith.index_cast %60 : i32 to index
    %c0_32 = arith.constant 0 : index
    %62 = vector.load %arg10[%61, %c0_32] : memref<64x32xf32, #tpu.memory_space<vmem>>, vector<8x32xf32>
    %cst_33 = arith.constant dense<0.000000e+00> : vector<8x32xf32>
    %63 = tpu.matmul %56, %12, %cst_33 {dimension_numbers = #tpu.dot_dimension_numbers<[1], [0], [0], [1], [0, 0, 1, 1], [], []>} : vector<8x32xf32>, vector<32x32xf32>, vector<8x32xf32> -> vector<8x32xf32>
    %64 = arith.addf %62, %63 : vector<8x32xf32>
    %65 = math.tanh %64 : vector<8x32xf32>
    %66 = arith.index_cast %60 : i32 to index
    %c0_34 = arith.constant 0 : index
    %67 = vector.load %arg10[%66, %c0_34] : memref<64x32xf32, #tpu.memory_space<vmem>>, vector<8x32xf32>
    tpu.vector_store %arg10[%66, %c0_34], %65 {strides = array<i32>} : memref<64x32xf32, #tpu.memory_space<vmem>>, vector<8x32xf32>,
    %c6_i32 = arith.constant 6 : i32
    %c8_i32_35 = arith.constant 8 : i32
    %68 = arith.muli %c6_i32, %c8_i32_35 : i32
    %69 = tpu.assume_multiple %68, 8 : i32
    %70 = arith.index_cast %69 : i32 to index
    %c0_36 = arith.constant 0 : index
    %71 = vector.load %arg10[%70, %c0_36] : memref<64x32xf32, #tpu.memory_space<vmem>>, vector<8x32xf32>
    %cst_37 = arith.constant dense<0.000000e+00> : vector<8x32xf32>
    %72 = tpu.matmul %65, %12, %cst_37 {dimension_numbers = #tpu.dot_dimension_numbers<[1], [0], [0], [1], [0, 0, 1, 1], [], []>} : vector<8x32xf32>, vector<32x32xf32>, vector<8x32xf32> -> vector<8x32xf32>
    %73 = arith.addf %71, %72 : vector<8x32xf32>
    %74 = math.tanh %73 : vector<8x32xf32>
    %75 = arith.index_cast %69 : i32 to index
    %c0_38 = arith.constant 0 : index
    %76 = vector.load %arg10[%75, %c0_38] : memref<64x32xf32, #tpu.memory_space<vmem>>, vector<8x32xf32>
    tpu.vector_store %arg10[%75, %c0_38], %74 {strides = array<i32>} : memref<64x32xf32, #tpu.memory_space<vmem>>, vector<8x32xf32>,
    %c7_i32 = arith.constant 7 : i32
    %c8_i32_39 = arith.constant 8 : i32
    %77 = arith.muli %c7_i32, %c8_i32_39 : i32
    %78 = tpu.assume_multiple %77, 8 : i32
    %79 = arith.index_cast %78 : i32 to index
    %c0_40 = arith.constant 0 : index
    %80 = vector.load %arg10[%79, %c0_40] : memref<64x32xf32, #tpu.memory_space<vmem>>, vector<8x32xf32>
    %cst_41 = arith.constant dense<0.000000e+00> : vector<8x32xf32>
    %81 = tpu.matmul %74, %12, %cst_41 {dimension_numbers = #tpu.dot_dimension_numbers<[1], [0], [0], [1], [0, 0, 1, 1], [], []>} : vector<8x32xf32>, vector<32x32xf32>, vector<8x32xf32> -> vector<8x32xf32>
    %82 = arith.addf %80, %81 : vector<8x32xf32>
    %83 = math.tanh %82 : vector<8x32xf32>
    %84 = arith.index_cast %78 : i32 to index
    %c0_42 = arith.constant 0 : index
    %85 = vector.load %arg10[%84, %c0_42] : memref<64x32xf32, #tpu.memory_space<vmem>>, vector<8x32xf32>
    tpu.vector_store %arg10[%84, %c0_42], %83 {strides = array<i32>} : memref<64x32xf32, #tpu.memory_space<vmem>>, vector<8x32xf32>,
    %c8_i32_43 = arith.constant 8 : i32
    %c0_44 = arith.constant 0 : index
    %c0_45 = arith.constant 0 : index
    %86 = vector.load %arg9[%c0_44, %c0_45] : memref<8x32xf32, #tpu.memory_space<vmem>>, vector<8x32xf32>
    tpu.vector_store %arg9[%c0_44, %c0_45], %83 {strides = array<i32>} : memref<8x32xf32, #tpu.memory_space<vmem>>, vector<8x32xf32>,
    %c0_46 = arith.constant 0 : index
    %c0_47 = arith.constant 0 : index
    %87 = vector.load %arg6[%c0_46, %c0_47] : memref<8x32xf32, #tpu.memory_space<vmem>>, vector<8x32xf32>
    %c0_48 = arith.constant 0 : index
    %c0_49 = arith.constant 0 : index
    %88 = vector.load %arg10[%c0_48, %c0_49] : memref<64x32xf32, #tpu.memory_space<vmem>>, vector<64x32xf32>
    %cst_50 = arith.constant dense<0.000000e+00> : vector<8x64xf32>
    %89 = tpu.matmul %87, %88, %cst_50 {dimension_numbers = #tpu.dot_dimension_numbers<[1], [1], [0], [0], [0, 0, 1, 0], [], []>} : vector<8x32xf32>, vector<64x32xf32>, vector<8x64xf32> -> vector<8x64xf32>
    %c0_51 = arith.constant 0 : index
    %c0_52 = arith.constant 0 : index
    %90 = vector.load %arg7[%c0_51, %c0_52] : memref<8x1xf32, #tpu.memory_space<vmem>>, vector<8x1xf32>
    %91 = vector.broadcast %90 : vector<8x1xf32> to vector<8x64xf32>
    %92 = arith.addf %89, %91 : vector<8x64xf32>
    %cst_53 = arith.constant 0.000000e+00 : f32
    %93 = vector.broadcast %cst_53 : f32 to vector<8x64xf32>
    %94 = arith.maximumf %92, %93 : vector<8x64xf32>
    %c0_54 = arith.constant 0 : index
    %c0_55 = arith.constant 0 : index
    %95 = vector.load %arg8[%c0_54, %c0_55] : memref<8x64xf32, #tpu.memory_space<vmem>>, vector<8x64xf32>
    tpu.vector_store %arg8[%c0_54, %c0_55], %94 {strides = array<i32>} : memref<8x64xf32, #tpu.memory_space<vmem>>, vector<8x64xf32>,
    return
  }
  func.func @transform_0(%arg0: i32) -> (i32, i32) {
    %c0_i32 = arith.constant 0 : i32
    %c0_i32_0 = arith.constant 0 : i32
    return %arg0, %c0_i32 : i32, i32
  }
  func.func @transform_1(%arg0: i32) -> (i32, i32) {
    %c0_i32 = arith.constant 0 : i32
    %c0_i32_0 = arith.constant 0 : i32
    %c0_i32_1 = arith.constant 0 : i32
    return %c0_i32, %c0_i32_0 : i32, i32
  }
  func.func @transform_2(%arg0: i32) -> (i32, i32) {
    %c0_i32 = arith.constant 0 : i32
    %c0_i32_0 = arith.constant 0 : i32
    %c0_i32_1 = arith.constant 0 : i32
    return %c0_i32, %c0_i32_0 : i32, i32
  }
  func.func @transform_3(%arg0: i32) -> (i32, i32) {
    %c0_i32 = arith.constant 0 : i32
    %c0_i32_0 = arith.constant 0 : i32
    %c0_i32_1 = arith.constant 0 : i32
    return %c0_i32, %c0_i32_0 : i32, i32
  }
  func.func @transform_4(%arg0: i32) -> (i32, i32) {
    %c0_i32 = arith.constant 0 : i32
    %c0_i32_0 = arith.constant 0 : i32
    %c0_i32_1 = arith.constant 0 : i32
    return %c0_i32, %c0_i32_0 : i32, i32
  }
  func.func @transform_5(%arg0: i32) -> (i32, i32) {
    %c0_i32 = arith.constant 0 : i32
    %c0_i32_0 = arith.constant 0 : i32
    %c0_i32_1 = arith.constant 0 : i32
    return %c0_i32, %c0_i32_0 : i32, i32
  }
  func.func @transform_6(%arg0: i32) -> (i32, i32) {
    %c0_i32 = arith.constant 0 : i32
    %c0_i32_0 = arith.constant 0 : i32
    %c0_i32_1 = arith.constant 0 : i32
    return %c0_i32, %c0_i32_0 : i32, i32
  }
  func.func @transform_7(%arg0: i32) -> (i32, i32) {
    %c0_i32 = arith.constant 0 : i32
    %c0_i32_0 = arith.constant 0 : i32
    return %c0_i32, %arg0 : i32, i32
  }
}

</mosaic_0001>

<bundles_post_ra>
// kernel: tpu_custom_call.1
= control target key start
LH: loop header
LB: loop body
LE: loop exit
PB: predicated region body
PF: predicated region fallthrough
CT: control target
= control target key end

     0   :  { %vm32_vm0 = vcmask 261120   ;;  %v1098_v1 = vmov 0.0   ;;  %vm1099_vm1 = vmmov 0   ;;  %v1100_v5 = vmov 0   ;;  %s1349_s0 = inlined_call_operand.vmem [shape: f32[64,1], index: 0, kind: input, shape index: {}]   ;;  %s1350_s1 = inlined_call_operand.vmem [shape: f32[8,32], index: 1, kind: input, shape index: {}]   ;;  %s1351_s2 = inlined_call_operand.vmem [shape: f32[1,32], index: 2, kind: input, shape index: {}]   ;;  %s1352_s3 = inlined_call_operand.vmem [shape: f32[32,32], index: 3, kind: input, shape index: {}]   ;;  %s1353_s4 = inlined_call_operand.vmem [shape: f32[1,32], index: 4, kind: input, shape index: {}]   ;;  %s1354_s5 = inlined_call_operand.vmem [shape: f32[8,32], index: 5, kind: input, shape index: {}]   ;;  %s1355_s6 = inlined_call_operand.vmem [shape: f32[8,1], index: 6, kind: input, shape index: {}]   ;;  %s1356_s7 = inlined_call_operand.hbm [shape: f32[8,64], index: 7, kind: output, shape index: {}]  }
   0x1   :  { %v1145_v0 = vld [vmem:[%s1352_s3 + $0x18] sm:$0xff]  ;;  %947 = vmatprep.subr.mxu1 %v1098_v1  ;;  %v1151_v2 = vld [vmem:[%s1352_s3 + $0x10] sm:$0xff]  ;;  %955 = vmatprep.mubr.msk.f32.mxu1 %vm1099_vm1, %v1098_v1  ;;  %v31_v3 = vld [vmem:[%s1350_s1] sm:$0xff] }
   0x2   :  { %v34_v4 = vld [vmem:[%s1349_s0] sm:$0xff]  ;;  %948 = vmatpush3.msra.mxu1 %v1145_v0  ;;  %33 = vst.msk [vmem:[#allocation2] sm:$0xff] %vm32_vm0, %v31_v3  ;;  %1058 = vset.pattern.permute.xlu0 %v1100_v5  ;;  %v1167_v6 = vld [vmem:[%s1352_s3 + $0x8] sm:$0xff] }
   0x3   :  { %949 = vmatprep.subr.mxu1 %v1098_v1  ;;  %45 = vperm.xlu0 %1058, %v34_v4   ;;  %v35_v7 = vld [vmem:[%s1349_s0 + $0x8] sm:$0xff] }
   0x4   :  { %950 = vmatpush3.msra.mxu1 %v1151_v2  ;;  %1059 = vset.pattern.permute.xlu1 %v1100_v5 }
   0x5   :  { %12 = vsyncpa [#allocation5], 0  ;;  %951 = vmatprep.subr.mxu1 %v1098_v1  ;;  %v1177_v8 = vld [vmem:[%s1352_s3] sm:$0xff]  ;;  %991 = vmatprep.subr.mxu0 %v1098_v1  ;;  %v40_v11 = vld [vmem:[%s1349_s0 + $0x30] sm:$0xff]  ;;  %s1101_s29 = smov [#allocation4]   ;;  %vm863_vm2 = vcmask 523264  }
   0x6   :  { %952 = vmatpush3.msra.mxu1 %v1167_v6  ;;  %992 = vmatpush3.msra.mxu0 %v1145_v0  ;;  %v38_v9 = vld [vmem:[%s1349_s0 + $0x20] sm:$0xff]  ;;  %v36_v32 = vld [vmem:[%s1349_s0 + $0x10] sm:$0xff]  ;;  %v37_v33 = vld [vmem:[%s1349_s0 + $0x18] sm:$0xff]  ;;  %s871_s30 = sshll.u32 %s1101_s29, 4  ;;  %s872_s30 = int_to_ptr.vmem [resolvable:$true] %s871_s30 }
   0x7   :  { %953 = vmatprep.subr.mxu1 %v1098_v1  ;;  %50 = vperm.xlu0 %1058, %v35_v7   ;;  %v759_v12 = vld [vmem:[%s1355_s6] sm:$0xff]  ;;  %v39_v34 = vld [vmem:[%s1349_s0 + $0x28] sm:$0xff]  ;;  %v41_v35 = vld [vmem:[%s1349_s0 + $0x38] sm:$0xff]  ;;  %s1076_s8 = scalar_lea.vmem %s872_s30, 128  ;;  %p1081_p1 = scmp.lt.s32.totalorder %s872_s30, %s872_s30 }
   0x8   :  { %954 = vmatpush3.msra.mxu1 %v1177_v8  ;;  %993 = vmatprep.subr.mxu0 %v1098_v1  ;;  %v1217_v13 = vld [vmem:[%s1351_s2] ss:$0 sm:$0xff]  ;;  %p1077_p0 = scmp.ne.s32.totalorder %s872_s30, %s1076_s8  ;;  %p1082_p2 = scmp.lt.s32.totalorder %s1076_s8, %s1076_s8 }
   0x9   :  { %v125_v10 = vld [vmem:[#allocation2] sm:$0xff]  ;;  %958 = vmatprep.subr.mxu1 %v1098_v1  ;;  %994 = vmatpush3.msra.mxu0 %v1151_v2 }
   0xa   :  { %956 = vmatmul.mubr.msk.f32.vlgmr.msra.gmra.mxu1 %vm32_vm0, %v125_v10  ;;  %995 = vmatprep.subr.mxu0 %v1098_v1  ;;  %v1222_v14 = vld [vmem:[%s1353_s4] ss:$0 sm:$0xff]  ;;  %p1083_p3 = por %p1082_p2, %p1081_p1 }
   0xb   :  { %65 = vperm.xlu0 %1058, %v38_v9   ;;  %959 = vmatpush3.msra.mxu1 %v1145_v0 }
   0xc   :  { %960 = vmatprep.subr.mxu1 %v1098_v1  ;;  %966 = vmatprep.mubr.msk.f32.mxu1 %vm1099_vm1, %v1098_v1  ;;  %p1084_p4 = pnand %p1083_p3, %p1077_p0 }
   0xd   :  { %961 = vmatpush3.msra.mxu1 %v1151_v2  ;;  %996 = vmatpush3.msra.mxu0 %v1167_v6 }
   0xe   :  { %962 = vmatprep.subr.mxu1 %v1098_v1  ;;  %997 = vmatprep.subr.mxu0 %v1098_v1 }
   0xf   :  { %75 = vperm.xlu0 %1058, %v40_v11   ;;  %963 = vmatpush3.msra.mxu1 %v1167_v6 }
  0x10   :  { %964 = vmatprep.subr.mxu1 %v1098_v1  ;;  %998 = vmatpush3.msra.mxu0 %v1177_v8 }
  0x11   :  { %965 = vmatpush3.msra.mxu1 %v1177_v8  ;;  %999 = vmatprep.mubr.msk.f32.mxu0 %vm1099_vm1, %v1098_v1 }
  0x12   :  { %969 = vmatprep.subr.mxu1 %v1098_v1  ;;  %1013 = vmatprep.subr.mxu0 %v1098_v1 }
  0x13   :  { %762 = vperm.xlu0 %1058, %v759_v12   ;;  %55 = vperm.xlu1 %1059, %v36_v32  }
  0x17   :  { %60 = vperm.xlu1 %1059, %v37_v33  }
  0x1b   :  { %70 = vperm.xlu1 %1059, %v39_v34  }
  0x1f   :  { %80 = vperm.xlu1 %1059, %v41_v35  }
  0x7e   :  { %v46_v15 = vpop.permute.xlu0 %45 }
  0x7f   :  { %v89_v16 = vmul.f32 %v1217_v13, %v46_v15 }
  0x81   :  { %v104_v17 = vadd.f32 %v1222_v14, %v89_v16 }
  0x82   :  { %v51_v18 = vpop.permute.xlu0 %50 }
  0x83   :  { %113 = vst.msk [vmem:[#allocation3] sm:$0xff] %vm32_vm0, %v104_v17  ;;  %v90_v19 = vmul.f32 %v1217_v13, %v51_v18 }
  0x85   :  { %v105_v20 = vadd.f32 %v1222_v14, %v90_v19 }
  0x86   :  { %v66_v21 = vpop.permute.xlu0 %65 }
  0x87   :  { %114 = vst.msk [vmem:[#allocation3 + $0x8] sm:$0xff] %vm32_vm0, %v105_v20  ;;  %v93_v22 = vmul.f32 %v1217_v13, %v66_v21 }
  0x89   :  { %v108_v23 = vadd.f32 %v1222_v14, %v93_v22 }
  0x8a   :  { %v76_v24 = vpop.permute.xlu0 %75  ;;  %v126_v27 = vld [vmem:[#allocation3] sm:$0xff] }
  0x8b   :  { %117 = vst.msk [vmem:[#allocation3 + $0x20] sm:$0xff] %vm32_vm0, %v108_v23  ;;  %v95_v25 = vmul.f32 %v1217_v13, %v76_v24 }
  0x8d   :  { %v110_v26 = vadd.f32 %v1222_v14, %v95_v25 }
  0x8e   :  { %v204_v36 = vld [vmem:[#allocation3 + $0x8] sm:$0xff]  ;;  %v56_v40 = vpop.permute.xlu1 %55 }
  0x8f   :  { %119 = vst.msk [vmem:[#allocation3 + $0x30] sm:$0xff] %vm32_vm0, %v110_v26  ;;  %v91_v41 = vmul.f32 %v1217_v13, %v56_v40 }
  0x91   :  { %v106_v43 = vadd.f32 %v1222_v14, %v91_v41 }
  0x92   :  { %v61_v44 = vpop.permute.xlu1 %60  ;;  %v438_v63 = vld [vmem:[#allocation3 + $0x20] sm:$0xff] }
  0x93   :  { %115 = vst.msk [vmem:[#allocation3 + $0x10] sm:$0xff] %vm32_vm0, %v106_v43  ;;  %v92_v45 = vmul.f32 %v1217_v13, %v61_v44 }
  0x95   :  { %v107_v46 = vadd.f32 %v1222_v14, %v92_v45 }
  0x96   :  { %v71_v47 = vpop.permute.xlu1 %70 }
  0x97   :  { %116 = vst.msk [vmem:[#allocation3 + $0x18] sm:$0xff] %vm32_vm0, %v107_v46  ;;  %v94_v48 = vmul.f32 %v1217_v13, %v71_v47 }
  0x99   :  { %v109_v49 = vadd.f32 %v1222_v14, %v94_v48 }
  0x9a   :  { %v81_v50 = vpop.permute.xlu1 %80  ;;  %v282_v53 = vld [vmem:[#allocation3 + $0x10] sm:$0xff] }
  0x9b   :  { %118 = vst.msk [vmem:[#allocation3 + $0x28] sm:$0xff] %vm32_vm0, %v109_v49  ;;  %v96_v51 = vmul.f32 %v1217_v13, %v81_v50 }
  0x9d   :  { %v111_v52 = vadd.f32 %v1222_v14, %v96_v51 }
  0x9e   :  { %v360_v58 = vld [vmem:[#allocation3 + $0x18] sm:$0xff] }
  0x9f   :  { %120 = vst.msk [vmem:[#allocation3 + $0x38] sm:$0xff] %vm32_vm0, %v111_v52 }
  0xa2   :  { %v516_v9 = vld [vmem:[#allocation3 + $0x28] sm:$0xff] }
  0xca   :  { %v196_v28 = vpop.f32.mrf.mxu1 }
  0xcb   :  { %v200_v29 = vadd.f32 %v196_v28, %v126_v27  ;;  %v750_v28 = vld [vmem:[%s1354_s5] sm:$0xff] }
  0xcc   :  { %v957_v30 = vpop.f32.mrf.mxu1 }
  0xcd   :  { %1060 = vtanh.f32 %v200_v29  ;;  %v763_v29 = vpop.permute.xlu0 %762 }
  0xda   :  { %v1061_v31 = vpop.eup %1060 }
  0xdb   :  { %202 = vst.msk [vmem:[#allocation3] sm:$0xff] %vm32_vm0, %v1061_v31  ;;  %967 = vmatmul.mubr.msk.f32.vlgmr.msra.gmra.mxu1 %vm32_vm0, %v1061_v31 }
  0xdc   :  { %970 = vmatpush3.msra.mxu1 %v1145_v0  ;;  %977 = vmatprep.mubr.msk.f32.mxu1 %vm1099_vm1, %v1098_v1 }
  0xdd   :  { %971 = vmatprep.subr.mxu1 %v1098_v1 }
  0xde   :  { %972 = vmatpush3.msra.mxu1 %v1151_v2 }
  0xdf   :  { %973 = vmatprep.subr.mxu1 %v1098_v1 }
  0xe0   :  { %974 = vmatpush3.msra.mxu1 %v1167_v6 }
  0xe1   :  { %975 = vmatprep.subr.mxu1 %v1098_v1 }
  0xe2   :  { %976 = vmatpush3.msra.mxu1 %v1177_v8  ;;  %v751_v27 = vld [vmem:[#allocation3] sm:$0xff] }
  0xe3   :  { %980 = vmatprep.subr.mxu1 %v1098_v1 }
 0x19b   :  { %v274_v37 = vpop.f32.mrf.mxu1 }
 0x19c   :  { %v278_v38 = vadd.f32 %v274_v37, %v204_v36 }
 0x19d   :  { %v968_v39 = vpop.f32.mrf.mxu1 }
 0x19e   :  { %1062 = vtanh.f32 %v278_v38 }
 0x1ab   :  { %v1063_v42 = vpop.eup %1062 }
 0x1ac   :  { %280 = vst.msk [vmem:[#allocation3 + $0x8] sm:$0xff] %vm32_vm0, %v1063_v42  ;;  %978 = vmatmul.mubr.msk.f32.vlgmr.msra.gmra.mxu1 %vm32_vm0, %v1063_v42 }
 0x1ad   :  { %981 = vmatpush3.msra.mxu1 %v1145_v0  ;;  %988 = vmatprep.mubr.msk.f32.mxu1 %vm1099_vm1, %v1098_v1 }
 0x1ae   :  { %982 = vmatprep.subr.mxu1 %v1098_v1 }
 0x1af   :  { %983 = vmatpush3.msra.mxu1 %v1151_v2 }
 0x1b0   :  { %984 = vmatprep.subr.mxu1 %v1098_v1 }
 0x1b1   :  { %985 = vmatpush3.msra.mxu1 %v1167_v6 }
 0x1b2   :  { %986 = vmatprep.subr.mxu1 %v1098_v1 }
 0x1b3   :  { %987 = vmatpush3.msra.mxu1 %v1177_v8  ;;  %v752_v26 = vld [vmem:[#allocation3 + $0x8] sm:$0xff] }
 0x1b4   :  { %1002 = vmatprep.subr.mxu1 %v1098_v1 }
 0x26c   :  { %v352_v54 = vpop.f32.mrf.mxu1 }
 0x26d   :  { %v356_v55 = vadd.f32 %v352_v54, %v282_v53 }
 0x26e   :  { %v979_v56 = vpop.f32.mrf.mxu1 }
 0x26f   :  { %1064 = vtanh.f32 %v356_v55 }
 0x27c   :  { %v1065_v57 = vpop.eup %1064 }
 0x27d   :  { %358 = vst.msk [vmem:[#allocation3 + $0x10] sm:$0xff] %vm32_vm0, %v1065_v57  ;;  %989 = vmatmul.mubr.msk.f32.vlgmr.msra.gmra.mxu1 %vm32_vm0, %v1065_v57 }
 0x27e   :  { %1003 = vmatpush3.msra.mxu1 %v1145_v0  ;;  %1010 = vmatprep.mubr.msk.f32.mxu1 %vm1099_vm1, %v1098_v1 }
 0x27f   :  { %1004 = vmatprep.subr.mxu1 %v1098_v1 }
 0x280   :  { %1005 = vmatpush3.msra.mxu1 %v1151_v2 }
 0x281   :  { %1006 = vmatprep.subr.mxu1 %v1098_v1 }
 0x282   :  { %1007 = vmatpush3.msra.mxu1 %v1167_v6 }
 0x283   :  { %1008 = vmatprep.subr.mxu1 %v1098_v1 }
 0x284   :  { %1009 = vmatpush3.msra.mxu1 %v1177_v8  ;;  %v753_v25 = vld [vmem:[#allocation3 + $0x10] sm:$0xff] }
 0x285   :  { %1024 = vmatprep.subr.mxu1 %v1098_v1 }
 0x33d   :  { %v430_v59 = vpop.f32.mrf.mxu1 }
 0x33e   :  { %v434_v60 = vadd.f32 %v430_v59, %v360_v58 }
 0x33f   :  { %v990_v61 = vpop.f32.mrf.mxu1 }
 0x340   :  { %1066 = vtanh.f32 %v434_v60 }
 0x34d   :  { %v1067_v62 = vpop.eup %1066 }
 0x34e   :  { %436 = vst.msk [vmem:[#allocation3 + $0x18] sm:$0xff] %vm32_vm0, %v1067_v62  ;;  %1000 = vmatmul.mubr.msk.f32.vlgmr.msra.gmra.mxu0 %vm32_vm0, %v1067_v62 }
 0x34f   :  { %1014 = vmatpush3.msra.mxu0 %v1145_v0  ;;  %1021 = vmatprep.mubr.msk.f32.mxu0 %vm1099_vm1, %v1098_v1 }
 0x350   :  { %1015 = vmatprep.subr.mxu0 %v1098_v1 }
 0x351   :  { %1016 = vmatpush3.msra.mxu0 %v1151_v2 }
 0x352   :  { %1017 = vmatprep.subr.mxu0 %v1098_v1 }
 0x353   :  { %1018 = vmatpush3.msra.mxu0 %v1167_v6 }
 0x354   :  { %1019 = vmatprep.subr.mxu0 %v1098_v1 }
 0x355   :  { %1020 = vmatpush3.msra.mxu0 %v1177_v8  ;;  %v754_v24 = vld [vmem:[#allocation3 + $0x18] sm:$0xff] }
 0x356   :  { %1035 = vmatprep.subr.mxu0 %v1098_v1 }
 0x40e   :  { %v508_v3 = vpop.f32.mrf.mxu0 }
 0x40f   :  { %v512_v4 = vadd.f32 %v508_v3, %v438_v63 }
 0x410   :  { %v1001_v5 = vpop.f32.mrf.mxu0 }
 0x411   :  { %1068 = vtanh.f32 %v512_v4 }
 0x41e   :  { %v1069_v7 = vpop.eup %1068 }
 0x41f   :  { %514 = vst.msk [vmem:[#allocation3 + $0x20] sm:$0xff] %vm32_vm0, %v1069_v7  ;;  %1011 = vmatmul.mubr.msk.f32.vlgmr.msra.gmra.mxu1 %vm32_vm0, %v1069_v7 }
 0x420   :  { %1025 = vmatpush3.msra.mxu1 %v1145_v0  ;;  %1032 = vmatprep.mubr.msk.f32.mxu1 %vm1099_vm1, %v1098_v1 }
 0x421   :  { %1026 = vmatprep.subr.mxu1 %v1098_v1 }
 0x422   :  { %1027 = vmatpush3.msra.mxu1 %v1151_v2  ;;  %v594_v2 = vld [vmem:[#allocation3 + $0x30] sm:$0xff] }
 0x423   :  { %1028 = vmatprep.subr.mxu1 %v1098_v1 }
 0x424   :  { %1029 = vmatpush3.msra.mxu1 %v1167_v6 }
 0x425   :  { %1030 = vmatprep.subr.mxu1 %v1098_v1 }
 0x426   :  { %1031 = vmatpush3.msra.mxu1 %v1177_v8  ;;  %v672_v8 = vld [vmem:[#allocation3 + $0x38] sm:$0xff]  ;;  %v755_v23 = vld [vmem:[#allocation3 + $0x20] sm:$0xff] }
 0x4df   :  { %v586_v10 = vpop.f32.mrf.mxu1 }
 0x4e0   :  { %v590_v11 = vadd.f32 %v586_v10, %v516_v9 }
 0x4e1   :  { %v1012_v12 = vpop.f32.mrf.mxu1 }
 0x4e2   :  { %1070 = vtanh.f32 %v590_v11 }
 0x4ef   :  { %v1071_v0 = vpop.eup %1070 }
 0x4f0   :  { %592 = vst.msk [vmem:[#allocation3 + $0x28] sm:$0xff] %vm32_vm0, %v1071_v0  ;;  %1022 = vmatmul.mubr.msk.f32.vlgmr.msra.gmra.mxu0 %vm32_vm0, %v1071_v0 }
 0x4f1   :  { %1051 = vmatprep.mubr.msk.f32.mxu0 %vm1099_vm1, %v1098_v1 }
 0x4f7   :  { %v756_v22 = vld [vmem:[#allocation3 + $0x28] sm:$0xff] }
 0x5b0   :  { %v664_v13 = vpop.f32.mrf.mxu0 }
 0x5b1   :  { %v668_v6 = vadd.f32 %v664_v13, %v594_v2 }
 0x5b2   :  { %v1023_v14 = vpop.f32.mrf.mxu0 }
 0x5b3   :  { %1072 = vtanh.f32 %v668_v6 }
 0x5c0   :  { %v1073_v15 = vpop.eup %1072 }
 0x5c1   :  { %670 = vst.msk [vmem:[#allocation3 + $0x30] sm:$0xff] %vm32_vm0, %v1073_v15  ;;  %1033 = vmatmul.mubr.msk.f32.vlgmr.msra.gmra.mxu1 %vm32_vm0, %v1073_v15 }
 0x5c8   :  { %v757_v21 = vld [vmem:[#allocation3 + $0x30] sm:$0xff] }
 0x681   :  { %v742_v16 = vpop.f32.mrf.mxu1 }
 0x682   :  { %v746_v17 = vadd.f32 %v742_v16, %v672_v8 }
 0x683   :  { %v1034_v18 = vpop.f32.mrf.mxu1 }
 0x684   :  { %1074 = vtanh.f32 %v746_v17 }
 0x691   :  { %v1075_v19 = vpop.eup %1074 }
 0x692   :  { %748 = vst.msk [vmem:[#allocation3 + $0x38] sm:$0xff] %vm32_vm0, %v1075_v19  ;;  %749 = vst.msk [vmem:[#allocation2] sm:$0xff] %vm32_vm0, %v1075_v19 }
 0x699   :  { %v758_v20 = vld [vmem:[#allocation3 + $0x38] sm:$0xff] }
 0x69a   :  { %1036 = vmatpush3.xpose.msk.msra.mxu0 %vm32_vm0, %v758_v20 }
 0x69b   :  { %1037 = vmatprep.subr.mxu0 %v1098_v1 }
 0x69e   :  { %1038 = vmatpush3.xpose.msk.msra.mxu0 %vm32_vm0, %v757_v21 }
 0x69f   :  { %1039 = vmatprep.subr.mxu0 %v1098_v1 }
 0x6a2   :  { %1040 = vmatpush3.xpose.msk.msra.mxu0 %vm32_vm0, %v756_v22 }
 0x6a3   :  { %1041 = vmatprep.subr.mxu0 %v1098_v1 }
 0x6a6   :  { %1042 = vmatpush3.xpose.msk.msra.mxu0 %vm32_vm0, %v755_v23 }
 0x6a7   :  { %1043 = vmatprep.subr.mxu0 %v1098_v1 }
 0x6aa   :  { %1044 = vmatpush3.xpose.msk.msra.mxu0 %vm32_vm0, %v754_v24 }
 0x6ab   :  { %1045 = vmatprep.subr.mxu0 %v1098_v1 }
 0x6ae   :  { %1046 = vmatpush3.xpose.msk.msra.mxu0 %vm32_vm0, %v753_v25 }
 0x6af   :  { %1047 = vmatprep.subr.mxu0 %v1098_v1 }
 0x6b2   :  { %1048 = vmatpush3.xpose.msk.msra.mxu0 %vm32_vm0, %v752_v26 }
 0x6b3   :  { %1049 = vmatprep.subr.mxu0 %v1098_v1 }
 0x6b6   :  { %1050 = vmatpush3.xpose.msk.msra.mxu0 %vm32_vm0, %v751_v27 }
 0x6b9   :  { %1052 = vmatmul.mubr.msk.f32.vlgmr.msra.gmra.mxu0 %vm32_vm0, %v750_v28 }
 0x779   :  { %v858_v30 = vpop.f32.mrf.mxu0 }
 0x77a   :  { %v859_v31 = vadd.f32 %v858_v30, %v763_v29 }
 0x77b   :  { %v1053_v32 = vpop.f32.mrf.mxu0 }
 0x77c   :  { %v862_v33 = vmax.f32 %v859_v31, 0.0 }
 0x77e   :  { %864 = vst.msk [vmem:[#allocation4] sm:$0xff] %vm863_vm2, %v862_v33 }
 0x77f   :  { %1087 = shalt.err (!%p1084_p4)
}
 0x780   :  { %874 = dma.vmem_to_hbm [thread:$0]  %s872_s30, 128, %s1356_s7, [#allocation5]  }
 0x781   :  { %1096 = dma.done.wait [#allocation5], 128  }
 0x782   :  { %1097 = vsyncadd [#allocation5], 4294967168 }
 0x783   :  { %878 = vsyncpa [#allocation5], 1 }

</bundles_post_ra>
